<compile_context>
chip_gen: v7x
topology: tpu7x:2x2x1
jax: 0.10.0
libtpu: 0.0.40
codegen_flags: <defaults>
</compile_context>

<pallas_src>
import functools

import jax
import jax.numpy as jnp
from jax import lax
from jax.experimental import pallas as pl
from jax.experimental.pallas import tpu as pltpu

EPS = 1e-6
_LANE = 128


def _round_up(x, m):
    return ((x + m - 1) // m) * m


def _device_kind():
    try:
        return jax.devices()[0].device_kind.lower()
    except Exception:
        return ""


def _default_num_splits():
    """2 on dual-TensorCore chips (v4 / v5p / v7x), else 1 (v5e / v6e are single-TC)."""
    kind = _device_kind()
    return 2 if any(t in kind for t in ("v4", "v5p", "v7")) else 1


def _default_bf16_logs():
    """bf16 EUP/VPU transcendental paths exist on v6e and newer; keep f32 elsewhere."""
    kind = _device_kind()
    return any(t in kind for t in ("v6", "v7"))


def _choose_tiling(n, *, max_thw=8192, num_splits=None):
    """Pick (hw_tile, num_splits, blocks_per_split, total_blocks) for the HW axis."""
    if num_splits is None:
        num_splits = _default_num_splits()
    # Largest lane-aligned tile <= max_thw while aiming for >= 2 blocks per split so the
    # DMA pipeline stays double-buffered on each core.
    thw = min(max_thw, _round_up(pl.cdiv(n, 2 * num_splits), _LANE))
    total_blocks = pl.cdiv(n, thw)
    if total_blocks < num_splits:
        num_splits = 1
    nb = pl.cdiv(total_blocks, num_splits)
    return thw, num_splits, nb, total_blocks


def _ce_kernel(seg_ref, gt_ref, out_ref, *, n_valid, inv_hw, bf16_logs):
    # seg_ref: (K, tHW) f32 block of predicted mask probabilities (lane-dense)
    # gt_ref : (G, tHW) bf16 block of flattened binary GT instance masks
    # out_ref: (1, K, G) f32 per-split output; VMEM-resident across the inner HW axis,
    #          used directly as the accumulator (no scratch).
    c = pl.program_id(0)
    j = pl.program_id(1)
    nb = pl.num_programs(1)

    @pl.when(j == 0)
    def _():
        out_ref[...] = jnp.zeros_like(out_ref)

    thw = seg_ref.shape[1]
    # Lane-validity mask for ragged / overshooting HW tiles.  The out-of-range part of a
    # boundary block holds unspecified data, so mask BEFORE the logs (garbage would turn
    # into NaN and poison the MXU accumulation).
    col0 = (c * nb + j) * thw
    lane = lax.broadcasted_iota(jnp.int32, (1, thw), 1)
    valid = (col0 + lane) < n_valid                                    # (1, tHW)

    seg = jnp.where(valid, seg_ref[...], 0.5)                          # (K, tHW) f32
    gt = jnp.where(valid, gt_ref[...], 0.0)                            # (G, tHW) bf16

    if bf16_logs:
        # v6e/v7x: EUP has a native bf16 path -> roughly halves the binding transcendental
        # cost.  Adds/subs stay f32 on the VPU (which has slack) to limit cancellation.
        log_s = jnp.log((seg + EPS).astype(jnp.bfloat16))
        log_1ms = jnp.log((1.0 - seg + EPS).astype(jnp.bfloat16))
        logit = log_s - log_1ms                                        # bf16 MXU operand
        log_1ms_f32 = log_1ms.astype(jnp.float32)
    else:
        log_s = jnp.log(seg + EPS)
        log_1ms_f32 = jnp.log(1.0 - seg + EPS)
        logit = (log_s - log_1ms_f32).astype(jnp.bfloat16)             # bf16 MXU operand

    # sum_hw [gt*log(s) + (1-gt)*log(1-s)] = logit @ gt^T + rowsum(log(1-s))  (bcast over G)
    dims = (((1,), (1,)), ((), ()))                                    # contract the HW axis
    row = jnp.sum(jnp.where(valid, log_1ms_f32, 0.0), axis=1, keepdims=True)
    out_ref[...] += (
        lax.dot_general(logit, gt, dims, preferred_element_type=jnp.float32) + row
    )[None]

    @pl.when(j == nb - 1)
    def _():
        # ce = -mean_hw(...) = -(1/HW) * accumulated sum
        out_ref[...] = out_ref[...] * (-inv_hw)


def _ce_matrix(seg_kt, gt_flat, *, max_thw=8192, num_splits=None, bf16_logs=None):
    """CE[k, g] = mean BCE of predicted mask k vs GT instance g (Pallas kernel)."""
    k, n = seg_kt.shape
    g, _ = gt_flat.shape
    if bf16_logs is None:
        bf16_logs = _default_bf16_logs()
    thw, num_splits, nb, total_blocks = _choose_tiling(
        n, max_thw=max_thw, num_splits=num_splits)
    last_block = total_blocks - 1

    # Ragged / overshooting HW block indices are clamped here and masked in-kernel, so no
    # wrapper-side jnp.pad copy of the (K, HW) / (G, HW) operands is needed.
    def hw_index(c, j):
        return (0, jnp.minimum(c * nb + j, last_block))

    cost = pl.CostEstimate(
        flops=2 * k * g * n + 8 * k * n,
        transcendentals=2 * k * n,
        bytes_accessed=k * n * 4 + g * n * 2 + num_splits * k * g * 4,
    )

    partial_ce = pl.pallas_call(
        functools.partial(_ce_kernel, n_valid=n, inv_hw=1.0 / n, bf16_logs=bf16_logs),
        out_shape=jax.ShapeDtypeStruct((num_splits, k, g), jnp.float32),
        grid=(num_splits, nb),
        in_specs=[
            pl.BlockSpec((k, thw), hw_index),
            pl.BlockSpec((g, thw), hw_index),
        ],
        out_specs=pl.BlockSpec((1, k, g), lambda c, j: (c, 0, 0)),
        compiler_params=pltpu.CompilerParams(
            dimension_semantics=("parallel", "arbitrary")),
        cost_estimate=cost,
    )(seg_kt, gt_flat)

    return jnp.sum(partial_ce, axis=0)                  # (K, G); <=2 partials (dual-TC only)


def _greedy_match(ce):
    """(K, G) CE matrix -> (K, 1) int32 matching with greedy de-duplication."""
    k = ce.shape[0]
    ce_val = jnp.min(ce, axis=1)                        # (K,)
    matching = jnp.argmin(ce, axis=1)                   # (K,), first-min like torch
    max_index = jnp.max(matching) + 1
    # Among predictions matched to the same GT id, only the smallest-CE one (first on ties)
    # keeps its match; the rest get max_index (mimics the torch loop exactly).
    same = matching[None, :] == matching[:, None]       # (K, K) group membership
    masked = jnp.where(same, ce_val[None, :], 1.0e6)    # mimics ce_val_tmp[~mask] = 1e6
    winner = jnp.argmin(masked, axis=1)
    keep = winner == jnp.arange(k)
    # torch returns int64; int32 is JAX's default integer width.
    return jnp.where(keep, matching, max_index)[:, None].astype(jnp.int32)


@functools.partial(jax.jit, static_argnums=2)
def match_segmentation(segmentation, gt_instance, gt_plane_num):
    """JAX/Pallas equivalent of MatchSegmentation.forward.

    segmentation: (N, K) float32 probabilities in (0, 1), N == h * w
    gt_instance : (21, h, w) {0,1} ground-truth instance masks
    gt_plane_num: static Python int (number of valid GT planes)
    returns     : (K, 1) int32 matched gt instance id per predicted mask
    """
    n, k = segmentation.shape
    _, h, w = gt_instance.shape
    assert n == h * w, "segmentation rows must equal h*w of gt_instance"
    g = int(gt_plane_num)

    # TODO(synk): have the upstream producer emit segmentation already as (K, HW) so this
    # (N, K) -> (K, N) transpose (one full HBM pass) disappears end-to-end.
    seg_kt = jnp.asarray(segmentation, jnp.float32).T                 # (K, HW) lane-dense
    gt_flat = gt_instance[:g].reshape(g, n).astype(jnp.bfloat16)      # (G, HW), exact bf16

    ce = _ce_matrix(seg_kt, gt_flat)
    return _greedy_match(ce)


# ----------------------------- self-check helpers (host-side) -----------------------------

def _ce_reference(segmentation, gt_instance, gt_plane_num):
    """Pure-JAX f32 CE matrix mirroring the PyTorch module (self-check only)."""
    n, k = segmentation.shape
    g = int(gt_plane_num)
    gt = gt_instance[:g].reshape(g, n).astype(jnp.float32)            # (G, N)
    seg = jnp.asarray(segmentation, jnp.float32).T                    # (K, N)
    ce = -(gt[None] * jnp.log(seg[:, None] + EPS)
           + (1.0 - gt[None]) * jnp.log(1.0 - seg[:, None] + EPS))
    return ce.mean(axis=2)                                            # (K, G)


def _make_case(key, h, w, k, gt_plane_num, num_gt_slots=21):
    """Deterministic test case: mask i is a noisy copy of GT plane (i % gt_plane_num).

    Later duplicate copies get a lower logit amplitude so both the argmin and the greedy
    duplicate-resolution margins are far above the kernel's bf16 rounding noise, making
    the behavioral equality check robust.
    """
    n = h * w
    k_lab, k_noise = jax.random.split(key)
    labels = jax.random.randint(k_lab, (h, w), 0, gt_plane_num)
    gt_instance = (labels[None, :, :] == jnp.arange(num_gt_slots)[:, None, None]
                   ).astype(jnp.float32)                              # (21, h, w)
    planes = jnp.arange(k) % gt_plane_num
    amp = 3.0 - (jnp.arange(k) // gt_plane_num).astype(jnp.float32)   # 3, 2, 1, ...
    target = gt_instance[planes].reshape(k, n).T                      # (n, k)
    noise = jax.random.normal(k_noise, (n, k), dtype=jnp.float32)
    segmentation = jax.nn.sigmoid(amp[None, :] * (2.0 * target - 1.0) + 0.5 * noise)
    return segmentation, gt_instance


if __name__ == "__main__":
    key = jax.random.PRNGKey(0)
    cases = [
        (24, 20, 10, 5),   # n=480: exercises ragged HW tiles + duplicate de-dup
        (48, 64, 16, 7),   # n=3072: exact tiling, more masks / planes
    ]
    for i, (h, w, k, g) in enumerate(cases):
        segmentation, gt_instance = _make_case(jax.random.fold_in(key, i), h, w, k, g)

        out = match_segmentation(segmentation, gt_instance, g)
        jax.block_until_ready(out)
        assert out.shape == (k, 1) and out.dtype == jnp.int32

        # Behavioral check vs. the pure-JAX f32 reference: CE matrix agrees to bf16-level
        # tolerance; greedy matching is identical (margins >> bf16 MXU/EUP rounding).
        ce_ref = _ce_reference(segmentation, gt_instance, g)
        ce_ker = _ce_matrix(jnp.asarray(segmentation, jnp.float32).T,
                            gt_instance[:g].reshape(g, h * w).astype(jnp.bfloat16))
        assert jnp.allclose(ce_ker, ce_ref, rtol=3e-2, atol=3e-2), (
            float(jnp.max(jnp.abs(ce_ker - ce_ref))))
        ref_match = _greedy_match(ce_ref)
        assert jnp.array_equal(out, ref_match), (out.ravel(), ref_match.ravel())

    print("KERNEL_OK")
</pallas_src>

<mosaic_0001>
module attributes {stable_mosaic.version = 11 : i64} {
  func.func @_ce_kernel(%arg0: i32, %arg1: i32, %arg2: memref<10x256xf32, #tpu.memory_space<vmem>>, %arg3: memref<5x256xbf16, #tpu.memory_space<vmem>>, %arg4: memref<1x10x5xf32, #tpu.memory_space<vmem>>) attributes {dimension_semantics = [#tpu.dimension_semantics<parallel>, #tpu.dimension_semantics<arbitrary>], iteration_bounds = array<i64: 1, 2>, scalar_prefetch = 0 : i64, scratch_operands = 0 : i64, tpu.core_type = #tpu.core_type<tc>, window_params = [{transform_indices = @transform_0, window_bounds = array<i64: 10, 256>}, {transform_indices = @transform_1, window_bounds = array<i64: 5, 256>}, {transform_indices = @transform_2, window_bounds = array<i64: 1, 10, 5>}]} {
    %c0_i32 = arith.constant 0 : i32
    %0 = arith.cmpi eq, %arg1, %c0_i32 : i32
    %1 = arith.extui %0 : i1 to i32
    %c0_i32_0 = arith.constant 0 : i32
    %2 = arith.cmpi ne, %1, %c0_i32_0 : i32
    scf.if %2 {
      %cst_18 = arith.constant 0.000000e+00 : f32
      %48 = vector.broadcast %cst_18 : f32 to vector<1x10x5xf32>
      %c0_19 = arith.constant 0 : index
      %c0_20 = arith.constant 0 : index
      %c0_21 = arith.constant 0 : index
      %49 = vector.load %arg4[%c0_19, %c0_20, %c0_21] : memref<1x10x5xf32, #tpu.memory_space<vmem>>, vector<1x10x5xf32>
      tpu.vector_store %arg4[%c0_19, %c0_20, %c0_21], %48 {strides = array<i32>} : memref<1x10x5xf32, #tpu.memory_space<vmem>>, vector<1x10x5xf32>,
    } else {
    }
    %c2_i32 = arith.constant 2 : i32
    %3 = arith.muli %arg0, %c2_i32 : i32
    %4 = arith.addi %3, %arg1 : i32
    %c256_i32 = arith.constant 256 : i32
    %5 = arith.muli %4, %c256_i32 : i32
    %6 = tpu.iota {dimensions = array<i32: 1>} : vector<1x256xi32>
    %7 = vector.broadcast %5 : i32 to vector<1x256xi32>
    %8 = arith.addi %7, %6 : vector<1x256xi32>
    %c480_i32 = arith.constant 480 : i32
    %9 = vector.broadcast %c480_i32 : i32 to vector<1x256xi32>
    %10 = arith.cmpi slt, %8, %9 : vector<1x256xi32>
    %c0 = arith.constant 0 : index
    %c0_1 = arith.constant 0 : index
    %11 = vector.load %arg2[%c0, %c0_1] : memref<10x256xf32, #tpu.memory_space<vmem>>, vector<10x256xf32>
    %cst = arith.constant 5.000000e-01 : f32
    %12 = vector.shape_cast %10 : vector<1x256xi1> to vector<1x256xi1>
    %13 = vector.broadcast %12 : vector<1x256xi1> to vector<10x256xi1>
    %14 = vector.broadcast %cst : f32 to vector<10x256xf32>
    %15 = arith.select %13, %11, %14 : vector<10x256xi1>, vector<10x256xf32>
    %c0_2 = arith.constant 0 : index
    %c0_3 = arith.constant 0 : index
    %16 = vector.load %arg3[%c0_2, %c0_3] : memref<5x256xbf16, #tpu.memory_space<vmem>>, vector<5x256xbf16>
    %cst_4 = arith.constant 0.000000e+00 : f32
    %17 = arith.truncf %cst_4 : f32 to bf16
    %18 = vector.shape_cast %10 : vector<1x256xi1> to vector<1x256xi1>
    %19 = vector.broadcast %18 : vector<1x256xi1> to vector<5x256xi1>
    %20 = vector.broadcast %17 : bf16 to vector<5x256xbf16>
    %21 = arith.select %19, %16, %20 : vector<5x256xi1>, vector<5x256xbf16>
    %cst_5 = arith.constant 9.99999997E-7 : f32
    %22 = vector.broadcast %cst_5 : f32 to vector<10x256xf32>
    %23 = arith.addf %15, %22 : vector<10x256xf32>
    %24 = math.log %23 : vector<10x256xf32>
    %cst_6 = arith.constant 1.000000e+00 : f32
    %25 = vector.broadcast %cst_6 : f32 to vector<10x256xf32>
    %26 = arith.subf %25, %15 : vector<10x256xf32>
    %cst_7 = arith.constant 9.99999997E-7 : f32
    %27 = vector.broadcast %cst_7 : f32 to vector<10x256xf32>
    %28 = arith.addf %26, %27 : vector<10x256xf32>
    %29 = math.log %28 : vector<10x256xf32>
    %30 = arith.subf %24, %29 : vector<10x256xf32>
    %31 = arith.truncf %30 : vector<10x256xf32> to vector<10x256xbf16>
    %cst_8 = arith.constant 0.000000e+00 : f32
    %32 = vector.shape_cast %10 : vector<1x256xi1> to vector<1x256xi1>
    %33 = vector.broadcast %32 : vector<1x256xi1> to vector<10x256xi1>
    %34 = vector.broadcast %cst_8 : f32 to vector<10x256xf32>
    %35 = arith.select %33, %29, %34 : vector<10x256xi1>, vector<10x256xf32>
    %cst_9 = arith.constant dense<0.000000e+00> : vector<10xf32>
    %36 = vector.multi_reduction <add>, %35, %cst_9 [1] : vector<10x256xf32> to vector<10xf32>
    %37 = vector.shape_cast %36 : vector<10xf32> to vector<10x1xf32>
    %c0_10 = arith.constant 0 : index
    %c0_11 = arith.constant 0 : index
    %c0_12 = arith.constant 0 : index
    %38 = vector.load %arg4[%c0_10, %c0_11, %c0_12] : memref<1x10x5xf32, #tpu.memory_space<vmem>>, vector<1x10x5xf32>
    %cst_13 = arith.constant dense<0.000000e+00> : vector<10x5xf32>
    %39 = tpu.matmul %31, %21, %cst_13 {dimension_numbers = #tpu.dot_dimension_numbers<[1], [1], [0], [0], [0, 0, 1, 0], [], []>} : vector<10x256xbf16>, vector<5x256xbf16>, vector<10x5xf32> -> vector<10x5xf32>
    %40 = vector.broadcast %37 : vector<10x1xf32> to vector<10x5xf32>
    %41 = arith.addf %39, %40 : vector<10x5xf32>
    %42 = vector.shape_cast %41 : vector<10x5xf32> to vector<1x10x5xf32>
    %43 = arith.addf %38, %42 : vector<1x10x5xf32>
    %c0_14 = arith.constant 0 : index
    %c0_15 = arith.constant 0 : index
    %c0_16 = arith.constant 0 : index
    %44 = vector.load %arg4[%c0_14, %c0_15, %c0_16] : memref<1x10x5xf32, #tpu.memory_space<vmem>>, vector<1x10x5xf32>
    tpu.vector_store %arg4[%c0_14, %c0_15, %c0_16], %43 {strides = array<i32>} : memref<1x10x5xf32, #tpu.memory_space<vmem>>, vector<1x10x5xf32>,
    %c1_i32 = arith.constant 1 : i32
    %45 = arith.cmpi eq, %arg1, %c1_i32 : i32
    %46 = arith.extui %45 : i1 to i32
    %c0_i32_17 = arith.constant 0 : i32
    %47 = arith.cmpi ne, %46, %c0_i32_17 : i32
    scf.if %47 {
      %c0_18 = arith.constant 0 : index
      %c0_19 = arith.constant 0 : index
      %c0_20 = arith.constant 0 : index
      %48 = vector.load %arg4[%c0_18, %c0_19, %c0_20] : memref<1x10x5xf32, #tpu.memory_space<vmem>>, vector<1x10x5xf32>
      %cst_21 = arith.constant -0.00208333344 : f32
      %49 = vector.broadcast %cst_21 : f32 to vector<1x10x5xf32>
      %50 = arith.mulf %48, %49 : vector<1x10x5xf32>
      %c0_22 = arith.constant 0 : index
      %c0_23 = arith.constant 0 : index
      %c0_24 = arith.constant 0 : index
      %51 = vector.load %arg4[%c0_22, %c0_23, %c0_24] : memref<1x10x5xf32, #tpu.memory_space<vmem>>, vector<1x10x5xf32>
      tpu.vector_store %arg4[%c0_22, %c0_23, %c0_24], %50 {strides = array<i32>} : memref<1x10x5xf32, #tpu.memory_space<vmem>>, vector<1x10x5xf32>,
    } else {
    }
    return
  }
  func.func @transform_0(%arg0: i32, %arg1: i32) -> (i32, i32) {
    %c2_i32 = arith.constant 2 : i32
    %0 = arith.muli %arg0, %c2_i32 : i32
    %1 = arith.addi %0, %arg1 : i32
    %c1_i32 = arith.constant 1 : i32
    %2 = arith.minsi %1, %c1_i32 : i32
    %c0_i32 = arith.constant 0 : i32
    %c0_i32_0 = arith.constant 0 : i32
    return %c0_i32, %2 : i32, i32
  }
  func.func @transform_1(%arg0: i32, %arg1: i32) -> (i32, i32) {
    %c2_i32 = arith.constant 2 : i32
    %0 = arith.muli %arg0, %c2_i32 : i32
    %1 = arith.addi %0, %arg1 : i32
    %c1_i32 = arith.constant 1 : i32
    %2 = arith.minsi %1, %c1_i32 : i32
    %c0_i32 = arith.constant 0 : i32
    %c0_i32_0 = arith.constant 0 : i32
    return %c0_i32, %2 : i32, i32
  }
  func.func @transform_2(%arg0: i32, %arg1: i32) -> (i32, i32, i32) {
    %c0_i32 = arith.constant 0 : i32
    %c0_i32_0 = arith.constant 0 : i32
    %c0_i32_1 = arith.constant 0 : i32
    return %arg0, %c0_i32, %c0_i32_0 : i32, i32, i32
  }
}

</mosaic_0001>

<bundles_post_ra>
// kernel: match_segmentation.1
= control target key start
LH: loop header
LB: loop body
LE: loop exit
PB: predicated region body
PF: predicated region fallthrough
CT: control target
= control target key end

     0   :  { %s608_s9 = smov 0   ;;  %s610_s10 = smov 0   ;;  %s728_s0 = inlined_call_operand.vmem [shape: f32[10,480], index: 0, kind: input, shape index: {}]   ;;  %s729_s1 = inlined_call_operand.vmem [shape: bf16[5,480], index: 1, kind: input, shape index: {}]   ;;  %s730_s2 = inlined_call_operand.vmem [shape: f32[1,10,5], index: 2, kind: output, shape index: {}]  }
   0x1   :  { %s612_s11 = smov 0   ;;  %s614_s12 = smov 0  }
   0x2   :  { %s616_s13 = smov 0  }
   0x3 LB: > { %s21_s14 = sadd.s32 1, %s586_s12  ;;  %p30_p0 = scmp.lt.s32.totalorder %s586_s12, 1  ;;  %s590_s13 = sphi %s616_s13, %s12_s13   ;;  %s586_s12 = sphi %s614_s12, %s734_s12   ;;  %s582_s11 = sphi %s612_s11, %s733_s11   ;;  %s578_s10 = sphi %s610_s10, %s732_s10   ;;  %s574_s9 = sphi %s608_s9, %s731_s9  }
   0x4   : > { %p22_p1 = scmp.ge.s32.totalorder %s21_s14, 2  ;;  %p46_p2 = scmp.ne.s32.totalorder %s578_s10, %s574_s9 }
   0x5   : > { %s31_s15 = scalar_select %p30_p0, %s586_s12, 1 }
   0x6   : > { %s736_s14 = smov (%p22_p1, %s21_s14), 0  ;;  %p47_p3 = scmp.eq.s32.totalorder %s590_s13, 0 }
   0x7   : > { %p34_p4 = scmp.lt.s32.totalorder %s736_s14, 1  ;;  %s39_s18 = sadd.s32 1, %s578_s10 }
   0x8   : > { %p48_p5 = por %p47_p3, %p46_p2  ;;  %p478_p7 = scmp.ge.s32.totalorder %s590_s13, 2 }
   0x9   : > { %s35_s16 = scalar_select %p34_p4, %s736_s14, 1 }
   0xa   : > { %132 = sbr.rel (%p478_p7) target bundleno = 24 (0x18), region = 16 }
   0xb   : > { %s36_s17 = ssub.s32 %s31_s15, %s35_s16 }
   0xc   : > { %p37_p6 = scmp.eq.s32.totalorder %s36_s17, 0 }
   0xe   : > { %s645_s19 = scalar_select %p37_p6, %s578_s10, %s39_s18  }
  0x11   : > { %135 = sbr.rel (!%p48_p5) target bundleno = 24 (0x18), region = 20  ;;  %s137_s20 = sand.u32 (%p48_p5), 1, %s578_s10  }
  0x12   : > { %s494_s21 = sshll.u32 (%p48_p5), %s31_s15, 4  ;;  %s479_s22 = sshll.u32 (%p48_p5), %s137_s20, 5 }
  0x13   : > { %s146_s25 = scalar_lea.vmem (%p48_p5), %s728_s0, %s494_s21  ;;  %s139_s26 = scalar_lea.vmem (%p48_p5), [#allocation2], %s479_s22 }
  0x14   : > { %v159_v0 = vld [vmem:[%s146_s25] sm:$0xff] (%p48_p5)  ;;  %v161_v1 = vld [vmem:[%s146_s25 + $0x8] sm:$0xff] (%p48_p5) }
  0x15   : > { %v163_v2 = vld [vmem:[%s146_s25 + $0x20] sm:$0xff] (%p48_p5)  ;;  %160 = vst [vmem:[%s139_s26] sm:$0xff] (%p48_p5), %v159_v0  ;;  %162 = vst [vmem:[%s139_s26 + $0x8] sm:$0xff] (%p48_p5), %v161_v1  ;;  %v165_v3 = vld [vmem:[%s146_s25 + $0x28] sm:$0xff] (%p48_p5) }
  0x16   : > { %164 = vst [vmem:[%s139_s26 + $0x10] sm:$0xff] (%p48_p5), %v163_v2  ;;  %166 = vst [vmem:[%s139_s26 + $0x18] sm:$0xff] (%p48_p5), %v165_v3 }
  0x18 PF: > { %p482_p8 = scmp.ge.s32.totalorder %s590_s13, 1  ;;  %p188_p9 = scmp.lt.s32.totalorder %s590_s13, 3 }
  0x1a   : > { %p189_p10 = pnand %p482_p8, %p188_p9 }
  0x1b   : > { %s195_s27 = sand.u32 (!%p189_p10), 1, %s574_s9   ;;  %p232_p11 = scmp.lt.s32.totalorder (!%p189_p10), %s582_s11, 1 }
  0x1c   : > { %192 = sbr.rel (%p189_p10) target bundleno = 307 (0x133), region = 47  ;;  %s483_s28 = sshll.u32 (!%p189_p10), %s195_s27, 5 }
  0x1d   : > { %s197_s7 = scalar_lea.vmem (!%p189_p10), [#allocation2], %s483_s28  ;;  %p486_p13 = scmp.ne.s32.totalorder (!%p189_p10), %s582_s11, 0 }
  0x23   : > { %s233_s29 = scalar_select %p232_p11, %s582_s11, 1 }
  0x24   : > { %253 = sbr.rel (%p486_p13) target bundleno = 43 (0x2b), region = 55  ;;  %vm254_vm0 = vcmask (!%p486_p13), 39936   ;;  %vm256_vm1 = vcmask (!%p486_p13), 33792   ;;  %v592_v4 = vmov (!%p486_p13), 0.0  }
  0x25   : > { %s484_s30 = sshll.u32 %s233_s29, 1  ;;  %255 = vst.msk [vmem:[%s730_s2] sm:$0xff] (!%p486_p13), %vm254_vm0, %v592_v4 }
  0x26   : > { %p235_p12 = scmp.lt.s32.totalorder %s484_s30, 3  ;;  %257 = vst.msk [vmem:[%s730_s2 + $0x8] sm:$0x3] (!%p486_p13), %vm256_vm1, %v592_v4 }
  0x28   : > { %s738_s30 = smov (!%p235_p12, %s484_s30), 3 }
  0x29   : > { %s485_s3 = sshll.u32 %s738_s30, 2 }
  0x2a   : > { %s238_s6 = scalar_lea.vmem %s729_s1, %s485_s3 }
  0x2b PF: > { %s487_s17 = sshll.u32 %s582_s11, 8  ;;  %v261_v5 = vlaneseq  ;;  %v269_v10 = vld [vmem:[%s197_s7] sm:$0xff]  ;;  %v271_v11 = vld [vmem:[%s197_s7 + $0x10] sm:$0x3]  ;;  %v270_v13 = vld [vmem:[%s197_s7 + $0x8] sm:$0xff]  ;;  %vm325_vm5 = vcmask 1041408  }
  0x2c   : > { %v264_v6 = vstv %s487_s17  ;;  %v272_v14 = vld [vmem:[%s197_s7 + $0x18] sm:$0x3]  ;;  %v281_v15 = vld [vmem:[%s238_s6] sm:$0x77]  ;;  %vm383_vm6 = vcmask 39936   ;;  %vm385_vm7 = vcmask 33792  }
  0x2d   : > { %v262_v7 = vand.u32 127, %v261_v5  ;;  %v331_v2 = vld [vmem:[%s730_s2] sm:$0xff]  ;;  %p490_p0 = scmp.ne.s32.totalorder %s582_s11, 1 }
  0x2f   : > { %v263_v8 = vadd.s32 128, %v262_v7  ;;  %v668_v9 = vadd.s32 %v264_v6, %v262_v7  ;;  %v332_v7 = vld [vmem:[%s730_s2 + $0x8] sm:$0x3] }
  0x31   : > { %v266_v12 = vadd.s32 %v264_v6, %v263_v8  ;;  %vm267_vm2 = vcmp.lt.s32.totalorder %v668_v9, 480 }
  0x32   : > { %v277_v16 = vsel %vm267_vm2, %v269_v10, 0.5  ;;  %v279_v17 = vsel %vm267_vm2, %v271_v11, 0.5 }
  0x33   : > { %vm268_vm3 = vcmp.lt.s32.totalorder %v266_v12, 480  ;;  %v284_v18 = vadd.f32 1e-06, %v277_v16  ;;  %v296_v21 = vsub.f32 1.0, %v277_v16  ;;  %v298_v22 = vsub.f32 1.0, %v279_v17 }
  0x34   : > { %vm282_vm4 = vmpackc.low %vm268_vm3, %vm267_vm2  ;;  %v278_v19 = vsel %vm268_vm3, %v270_v13, 0.5  ;;  %v280_v20 = vsel %vm268_vm3, %v272_v14, 0.5  ;;  %v286_v31 = vadd.f32 1e-06, %v279_v17 }
  0x35   : > { %v283_v23 = vsel %vm282_vm4, %v281_v15, 0  ;;  %v285_v24 = vadd.f32 1e-06, %v278_v19  ;;  %v287_v25 = vadd.f32 1e-06, %v280_v20  ;;  %v297_v26 = vsub.f32 1.0, %v278_v19 }
  0x36   : > { %v489_v27 = vcombine.high %v283_v23, %v283_v23  ;;  %v488_v28 = vcombine.low %v283_v23, %v283_v23  ;;  %v299_v29 = vsub.f32 1.0, %v280_v20  ;;  %536 = vlog2.f32 %v284_v18 }
  0x37   : > { %538 = vlog2.f32 %v285_v24  ;;  %v301_v30 = vadd.f32 1e-06, %v297_v26  ;;  %v300_v33 = vadd.f32 1e-06, %v296_v21  ;;  %v302_v34 = vadd.f32 1e-06, %v298_v22 }
  0x38   : > { %340 = vmatprep.subr.bf16.mxu0 %v489_v27  ;;  %540 = vlog2.f32 %v287_v25  ;;  %v303_v32 = vadd.f32 1e-06, %v299_v29 }
  0x39   : > { %341 = vmatpush1.bf16.xpose.msra.mxu0 %v488_v28  ;;  %542 = vlog2.f32 %v301_v30 }
  0x3a   : > { %544 = vlog2.f32 %v303_v32 }
  0x3b   : > { %546 = vlog2.f32 %v286_v31 }
  0x3c   : > { %548 = vlog2.f32 %v300_v33 }
  0x3d   : > { %550 = vlog2.f32 %v302_v34 }
  0x40   : > { %v537_v35 = vpop.eup %536 }
  0x41   : > { %v539_v36 = vpop.eup %538  ;;  %v289_v45 = vmul.f32 0.6931472, %v537_v35 }
  0x42   : > { %v541_v37 = vpop.eup %540  ;;  %v291_v38 = vmul.f32 0.6931472, %v539_v36 }
  0x43   : > { %v543_v39 = vpop.eup %542  ;;  %v295_v40 = vmul.f32 0.6931472, %v541_v37 }
  0x44   : > { %v545_v41 = vpop.eup %544  ;;  %v307_v42 = vmul.f32 0.6931472, %v543_v39 }
  0x45   : > { %v547_v43 = vpop.eup %546  ;;  %v311_v44 = vmul.f32 0.6931472, %v545_v41 }
  0x46   : > { %v549_v46 = vpop.eup %548  ;;  %v313_v47 = vsub.f32 %v291_v38, %v307_v42  ;;  %v293_v48 = vmul.f32 0.6931472, %v547_v43  ;;  %v319_v52 = vsel %vm268_vm3, %v307_v42, 0.0 }
  0x47   : > { %v551_v49 = vpop.eup %550  ;;  %v315_v50 = vsub.f32 %v295_v40, %v311_v44  ;;  %v305_v51 = vmul.f32 0.6931472, %v549_v46  ;;  %v321_v53 = vsel %vm268_vm3, %v311_v44, 0.0 }
  0x48   : > { %v309_v54 = vmul.f32 0.6931472, %v551_v49  ;;  %v327_v58 = vsel %vm325_vm5, %v321_v53, 0.0 }
  0x49   : > { %v317_v55 = vpack.c.bf16 %v315_v50, %v313_v47  ;;  %v312_v56 = vsub.f32 %v289_v45, %v305_v51  ;;  %v318_v57 = vsel %vm267_vm2, %v305_v51, 0.0 }
  0x4a   : > { %v314_v59 = vsub.f32 %v293_v48, %v309_v54  ;;  %v322_v60 = vadd.f32 %v319_v52, %v318_v57  ;;  %v320_v61 = vsel %vm267_vm2, %v309_v54, 0.0 }
  0x4b   : > { %372 = vmatprep.mubr.bf16.mxu0 %v317_v55  ;;  %v326_v62 = vsel %vm325_vm5, %v320_v61, 0.0 }
  0x4c   : > { %v316_v63 = vpack.c.bf16 %v314_v59, %v312_v56  ;;  %323 = vadd.xlane.f32.xlu0 %v322_v60  ;;  %v328_v0 = vadd.f32 %v327_v58, %v326_v62 }
  0x4e   : > { %373 = vmatmul.mubr.bf16.vlgmr.msra.gmra.mrb[0].mxu0 %v316_v63 }
  0x50   : > { %329 = vadd.xlane.f32.xlu0 %v328_v0 }
  0xd9   : > { %v324_v1 = vpop.xlane.xlu0 %323 }
  0xdd   : > { %v330_v4 = vpop.xlane.xlu0 %329 }
 0x121   : > { %v374_v3 = vpop.f32.mrb[0].mxu0 }
 0x122   : > { %v375_v5 = vadd.f32 %v374_v3, %v324_v1  ;;  %v376_v6 = vpop.f32.mrb[1].mxu0  ;;  %390 = sbr.rel (%p490_p0) target bundleno = 307 (0x133), region = 59 }
 0x123   : > { %v377_v8 = vpop.f32.mrb[2].mxu0 }
 0x124   : > { %v381_v9 = vadd.f32 %v375_v5, %v331_v2  ;;  %v378_v10 = vadd.f32 %v377_v8, %v330_v4  ;;  %v379_v11 = vpop.f32.mrb[3].mxu0 }
 0x126   : > { %384 = vst.msk [vmem:[%s730_s2] sm:$0xff] %vm383_vm6, %v381_v9  ;;  %v382_v12 = vadd.f32 %v378_v10, %v332_v7 }
 0x128   : > { %386 = vst.msk [vmem:[%s730_s2 + $0x8] sm:$0x3] %vm385_vm7, %v382_v12 }
 0x12d   : > { %v391_v13 = vld [vmem:[%s730_s2] sm:$0xff] }
 0x12e   : > { %v393_v15 = vmul.f32 -0.0020833334, %v391_v13 }
 0x12f   : > { %v392_v14 = vld [vmem:[%s730_s2 + $0x8] sm:$0x3] }
 0x130   : > { %v394_v16 = vmul.f32 -0.0020833334, %v392_v14  ;;  %395 = vst.msk [vmem:[%s730_s2] sm:$0xff] %vm383_vm6, %v393_v15 }
 0x132   : > { %396 = vst.msk [vmem:[%s730_s2 + $0x8] sm:$0x3] %vm385_vm7, %v394_v16 }
 0x133 PF: > { %s12_s13 = sadd.s32 1, %s590_s13   ;;  %s731_s9 = smov %s578_s10 }
 0x134   : > { %p9_p1 = scmp.ge.s32.totalorder %s12_s13, 4   ;;  %s732_s10 = smov %s645_s19 }
 0x135   : > { %s733_s11 = smov %s586_s12  ;;  %s734_s12 = smov %s736_s14 }
 0x136   :  { %11 = sbr.rel (!%p9_p1) target bundleno = 3 (0x3), region = 97 }

</bundles_post_ra>
